<compile_context>
chip_gen: v5e
topology: v5e:2x2
jax: 0.10.0
libtpu: 0.0.40
codegen_flags: <defaults>
</compile_context>

<pallas_src>
import jax
import jax.numpy as jnp
from jax.experimental import pallas as pl
from jax.experimental.pallas import tpu as pltpu


def _round_up(n, m):
    return ((n + m - 1) // m) * m


def _cdiv(a, b):
    return (a + b - 1) // b


def _num_tensorcores():
    """TensorCores per device visible to one pallas_call (v7x / megacore = 2)."""
    try:
        kind = jax.devices()[0].device_kind.lower()
    except Exception:
        return 1
    if any(tag in kind for tag in ("v7", "7x", "v5p", "v4")):
        return 2
    return 1


def mlp_kernel(x_ref, w1_ref, b1_ref, w2_ref, b2_ref, w3_ref, b3_ref, o_ref):
    # x tile arrives (bm, d) f32 straight from HBM; cast to bf16 in VMEM.
    xb = x_ref[...].astype(jnp.bfloat16)
    # fc1: (64, d) x (bm, d), contracting d on both -> (64, bm).  Batch stays
    # lane-dense; the implied rhs transpose lands on the otherwise-idle XLU.
    h1 = jax.lax.dot_general(
        w1_ref[...], xb,
        dimension_numbers=(((1,), (1,)), ((), ())),
        preferred_element_type=jnp.float32)
    h1 = jnp.maximum(h1 + b1_ref[...], 0.0)
    # fc2: (128, 64) @ (64, bm) -> (128, bm), bf16 MXU inputs, f32 accumulation.
    h2 = jnp.dot(w2_ref[...], h1.astype(jnp.bfloat16),
                 preferred_element_type=jnp.float32)
    h2 = jnp.maximum(h2 + b2_ref[...], 0.0)
    # fc3 (out_features = 1): VPU multiply + sublane reduce -> (1, bm), already
    # lane-dense.  (Move to the MXU only if a bundle dump shows VALU saturating.)
    h3 = jnp.sum(h2 * w3_ref[...], axis=0, keepdims=True)
    o_ref[...] = jnp.maximum(h3 + b3_ref[...], 0.0).astype(o_ref.dtype)


def _net_forward_xla(x, p):
    """Plain fused XLA path for tiny batches (kernel/step overhead dominates)."""
    h1 = jnp.maximum(x @ p["w1"].T + p["b1"].T, 0.0)
    h2 = jnp.maximum(h1 @ p["w2"].T + p["b2"].T, 0.0)
    h3 = h2 @ p["w3"] + p["b3"].T
    return jnp.maximum(h3, 0.0)


def net_forward(x, params, *, bm_max=4096, min_pallas_batch=256):
    """x: (B, d) float32.  Returns (B, 1) float32 (fc1-relu-fc2-relu-fc3-relu)."""
    B, d = x.shape
    if B < min_pallas_batch:
        return _net_forward_xla(x, params)

    # --- batch-tile sizing ---------------------------------------------------
    # Lane-align the batch, then use the fewest grid steps that (a) keep the
    # per-step tile <= bm_max and (b) feed every TensorCore at least once (the
    # single grid axis is "parallel").  Single-TC chips (v5e/v6e) get one big
    # step whenever the batch fits, amortizing the ~0.35 us/step overhead and
    # the bias/ReLU/cast epilogue.  VMEM is tiny at this model size (x tile at
    # bm=4096, d=32 double-buffered ~1 MiB; h1/h2 intermediates ~3 MiB).
    n_tc = _num_tensorcores()
    B_lane = _round_up(B, 128)
    min_steps = n_tc if B_lane >= n_tc * 128 else 1
    steps = max(min_steps, _cdiv(B_lane, bm_max))
    bm = _round_up(_cdiv(B_lane, steps), 128)
    B_pad = steps * bm
    grid = (steps,)

    # bf16 operands for the MXU path (f32 accumulation inside the kernel);
    # the fc3 column and all biases stay f32 for the VPU epilogue.
    w1 = params["w1"].astype(jnp.bfloat16)          # (64, d)
    w2 = params["w2"].astype(jnp.bfloat16)          # (128, 64)
    w3 = params["w3"].astype(jnp.float32)           # (128, 1)
    b1 = params["b1"].astype(jnp.float32)           # (64, 1)
    b2 = params["b2"].astype(jnp.float32)           # (128, 1)
    b3 = params["b3"].astype(jnp.float32)           # (1, 1)

    # Only pad when the batch doesn't tile evenly; padded rows are zeros and
    # their outputs are sliced off below.  No transpose, no dtype cast: x
    # streams straight from HBM in its native layout.
    xp = jnp.pad(x, ((0, B_pad - B), (0, 0))) if B_pad != B else x

    cost = pl.CostEstimate(
        flops=2 * B_pad * (d * 64 + 64 * 128 + 128),
        transcendentals=0,
        bytes_accessed=(B_pad * d * 4 + B_pad * 4
                        + (64 * d + 128 * 64) * 2
                        + (64 + 128 + 128 + 1) * 4),
    )

    out = pl.pallas_call(
        mlp_kernel,
        out_shape=jax.ShapeDtypeStruct((1, B_pad), jnp.float32),
        grid_spec=pl.GridSpec(
            grid=grid,
            in_specs=[
                pl.BlockSpec((bm, d), lambda i: (i, 0)),     # x tile (streamed)
                # Constant block index => weights/biases stay resident in VMEM
                # across grid steps (no per-step re-DMA).
                pl.BlockSpec(w1.shape, lambda i: (0, 0)),
                pl.BlockSpec(b1.shape, lambda i: (0, 0)),
                pl.BlockSpec(w2.shape, lambda i: (0, 0)),
                pl.BlockSpec(b2.shape, lambda i: (0, 0)),
                pl.BlockSpec(w3.shape, lambda i: (0, 0)),
                pl.BlockSpec(b3.shape, lambda i: (0, 0)),
            ],
            out_specs=pl.BlockSpec((1, bm), lambda i: (0, i)),  # lane-dense out
        ),
        compiler_params=pltpu.CompilerParams(
            dimension_semantics=("parallel",),
        ),
        cost_estimate=cost,
    )(xp, w1, b1, w2, b2, w3, b3)

    return out[0, :B].reshape(B, 1)


def init_params(d, key):
    """nn.Linear-style init.  Weights stored (out, in); fc3 kept as a (128,1) column."""
    ks = jax.random.split(key, 6)

    def lin(kw, kb, fan_in, fan_out):
        bound = 1.0 / jnp.sqrt(fan_in)
        w = jax.random.uniform(kw, (fan_out, fan_in), jnp.float32, -bound, bound)
        b = jax.random.uniform(kb, (fan_out, 1), jnp.float32, -bound, bound)
        return w, b

    w1, b1 = lin(ks[0], ks[1], d, 64)      # (64, d), (64, 1)
    w2, b2 = lin(ks[2], ks[3], 64, 128)    # (128, 64), (128, 1)
    w3, b3 = lin(ks[4], ks[5], 128, 1)     # (1, 128), (1, 1)
    return {"w1": w1, "b1": b1, "w2": w2, "b2": b2,
            "w3": w3.T, "b3": b3}          # w3 stored as a (128, 1) column


def net_forward_ref(x, p):
    """Pure-JAX reference applying the same bf16 operand rounding as the kernel."""
    hi = jax.lax.Precision.HIGHEST
    rb = lambda a: a.astype(jnp.bfloat16).astype(jnp.float32)
    h1 = jnp.maximum(jnp.dot(rb(x), rb(p["w1"]).T, precision=hi) + p["b1"].T, 0.0)
    h2 = jnp.maximum(jnp.dot(rb(h1), rb(p["w2"]).T, precision=hi) + p["b2"].T, 0.0)
    h3 = jnp.dot(h2, p["w3"], precision=hi) + p["b3"].T
    return jnp.maximum(h3, 0.0)


if __name__ == "__main__":
    key = jax.random.PRNGKey(0)
    kx, kp = jax.random.split(key)

    B, d = 16, 32
    x = jax.random.normal(kx, (B, d), jnp.float32)
    params = init_params(d, kp)

    # Small-shape smoke test: force the Pallas path (bypass the tiny-batch XLA
    # fallback so the kernel itself runs).
    out = jax.block_until_ready(net_forward(x, params, min_pallas_batch=0))
    ref = net_forward_ref(x, params)
    assert out.shape == (B, 1)
    assert jnp.allclose(out, ref, atol=2e-3, rtol=2e-3), "mismatch vs reference (B=16)"

    # Larger, lane-aligned-but-not-tile-aligned batch through the default
    # dispatch (still the Pallas path) to exercise padding/multi-step tiling.
    B2 = 384
    x2 = jax.random.normal(jax.random.PRNGKey(1), (B2, d), jnp.float32)
    out2 = jax.block_until_ready(net_forward(x2, params))
    ref2 = net_forward_ref(x2, params)
    assert out2.shape == (B2, 1)
    assert jnp.allclose(out2, ref2, atol=2e-3, rtol=2e-3), "mismatch vs reference (B=384)"

    print("KERNEL_OK")
</pallas_src>

<mosaic_0001>
module attributes {stable_mosaic.version = 11 : i64} {
  func.func @mlp_kernel(%arg0: i32, %arg1: memref<128x32xf32, #tpu.memory_space<vmem>>, %arg2: memref<64x32xbf16, #tpu.memory_space<vmem>>, %arg3: memref<64x1xf32, #tpu.memory_space<vmem>>, %arg4: memref<128x64xbf16, #tpu.memory_space<vmem>>, %arg5: memref<128x1xf32, #tpu.memory_space<vmem>>, %arg6: memref<128x1xf32, #tpu.memory_space<vmem>>, %arg7: memref<1x1xf32, #tpu.memory_space<vmem>>, %arg8: memref<1x128xf32, #tpu.memory_space<vmem>>) attributes {dimension_semantics = [#tpu.dimension_semantics<parallel>], iteration_bounds = array<i64: 1>, scalar_prefetch = 0 : i64, scratch_operands = 0 : i64, tpu.core_type = #tpu.core_type<tc>, window_params = [{transform_indices = @transform_0, window_bounds = array<i64: 128, 32>}, {pipeline_mode = #tpu.pipeline_mode<synchronous>, transform_indices = @transform_1, window_bounds = array<i64: 64, 32>}, {pipeline_mode = #tpu.pipeline_mode<synchronous>, transform_indices = @transform_2, window_bounds = array<i64: 64, 1>}, {pipeline_mode = #tpu.pipeline_mode<synchronous>, transform_indices = @transform_3, window_bounds = array<i64: 128, 64>}, {pipeline_mode = #tpu.pipeline_mode<synchronous>, transform_indices = @transform_4, window_bounds = array<i64: 128, 1>}, {pipeline_mode = #tpu.pipeline_mode<synchronous>, transform_indices = @transform_5, window_bounds = array<i64: 128, 1>}, {pipeline_mode = #tpu.pipeline_mode<synchronous>, transform_indices = @transform_6, window_bounds = array<i64: 1, 1>}, {transform_indices = @transform_7, window_bounds = array<i64: 1, 128>}]} {
    %c0 = arith.constant 0 : index
    %c0_0 = arith.constant 0 : index
    %0 = vector.load %arg1[%c0, %c0_0] : memref<128x32xf32, #tpu.memory_space<vmem>>, vector<128x32xf32>
    %1 = arith.truncf %0 : vector<128x32xf32> to vector<128x32xbf16>
    %c0_1 = arith.constant 0 : index
    %c0_2 = arith.constant 0 : index
    %2 = vector.load %arg2[%c0_1, %c0_2] : memref<64x32xbf16, #tpu.memory_space<vmem>>, vector<64x32xbf16>
    %cst = arith.constant dense<0.000000e+00> : vector<64x128xf32>
    %3 = tpu.matmul %2, %1, %cst {dimension_numbers = #tpu.dot_dimension_numbers<[1], [1], [0], [0], [0, 0, 1, 0], [], []>} : vector<64x32xbf16>, vector<128x32xbf16>, vector<64x128xf32> -> vector<64x128xf32>
    %c0_3 = arith.constant 0 : index
    %c0_4 = arith.constant 0 : index
    %4 = vector.load %arg3[%c0_3, %c0_4] : memref<64x1xf32, #tpu.memory_space<vmem>>, vector<64x1xf32>
    %5 = vector.broadcast %4 : vector<64x1xf32> to vector<64x128xf32>
    %6 = arith.addf %3, %5 : vector<64x128xf32>
    %cst_5 = arith.constant 0.000000e+00 : f32
    %7 = vector.broadcast %cst_5 : f32 to vector<64x128xf32>
    %8 = arith.maximumf %6, %7 : vector<64x128xf32>
    %c0_6 = arith.constant 0 : index
    %c0_7 = arith.constant 0 : index
    %9 = vector.load %arg4[%c0_6, %c0_7] : memref<128x64xbf16, #tpu.memory_space<vmem>>, vector<128x64xbf16>
    %10 = arith.truncf %8 : vector<64x128xf32> to vector<64x128xbf16>
    %cst_8 = arith.constant dense<0.000000e+00> : vector<128x128xf32>
    %11 = tpu.matmul %9, %10, %cst_8 {dimension_numbers = #tpu.dot_dimension_numbers<[1], [0], [0], [1], [0, 0, 1, 1], [], []>} : vector<128x64xbf16>, vector<64x128xbf16>, vector<128x128xf32> -> vector<128x128xf32>
    %c0_9 = arith.constant 0 : index
    %c0_10 = arith.constant 0 : index
    %12 = vector.load %arg5[%c0_9, %c0_10] : memref<128x1xf32, #tpu.memory_space<vmem>>, vector<128x1xf32>
    %13 = vector.broadcast %12 : vector<128x1xf32> to vector<128x128xf32>
    %14 = arith.addf %11, %13 : vector<128x128xf32>
    %cst_11 = arith.constant 0.000000e+00 : f32
    %15 = vector.broadcast %cst_11 : f32 to vector<128x128xf32>
    %16 = arith.maximumf %14, %15 : vector<128x128xf32>
    %c0_12 = arith.constant 0 : index
    %c0_13 = arith.constant 0 : index
    %17 = vector.load %arg6[%c0_12, %c0_13] : memref<128x1xf32, #tpu.memory_space<vmem>>, vector<128x1xf32>
    %18 = vector.broadcast %17 : vector<128x1xf32> to vector<128x128xf32>
    %19 = arith.mulf %16, %18 : vector<128x128xf32>
    %cst_14 = arith.constant dense<0.000000e+00> : vector<128xf32>
    %20 = vector.multi_reduction <add>, %19, %cst_14 [0] : vector<128x128xf32> to vector<128xf32>
    %21 = vector.shape_cast %20 : vector<128xf32> to vector<1x128xf32>
    %c0_15 = arith.constant 0 : index
    %c0_16 = arith.constant 0 : index
    %22 = vector.load %arg7[%c0_15, %c0_16] : memref<1x1xf32, #tpu.memory_space<vmem>>, vector<1x1xf32>
    %23 = vector.broadcast %22 : vector<1x1xf32> to vector<1x128xf32>
    %24 = arith.addf %21, %23 : vector<1x128xf32>
    %cst_17 = arith.constant 0.000000e+00 : f32
    %25 = vector.broadcast %cst_17 : f32 to vector<1x128xf32>
    %26 = arith.maximumf %24, %25 : vector<1x128xf32>
    %c0_18 = arith.constant 0 : index
    %c0_19 = arith.constant 0 : index
    %27 = vector.load %arg8[%c0_18, %c0_19] : memref<1x128xf32, #tpu.memory_space<vmem>>, vector<1x128xf32>
    tpu.vector_store %arg8[%c0_18, %c0_19], %26 {strides = array<i32>} : memref<1x128xf32, #tpu.memory_space<vmem>>, vector<1x128xf32>,
    return
  }
  func.func @transform_0(%arg0: i32) -> (i32, i32) {
    %c0_i32 = arith.constant 0 : i32
    %c0_i32_0 = arith.constant 0 : i32
    return %arg0, %c0_i32 : i32, i32
  }
  func.func @transform_1(%arg0: i32) -> (i32, i32) {
    %c0_i32 = arith.constant 0 : i32
    %c0_i32_0 = arith.constant 0 : i32
    %c0_i32_1 = arith.constant 0 : i32
    return %c0_i32, %c0_i32_0 : i32, i32
  }
  func.func @transform_2(%arg0: i32) -> (i32, i32) {
    %c0_i32 = arith.constant 0 : i32
    %c0_i32_0 = arith.constant 0 : i32
    %c0_i32_1 = arith.constant 0 : i32
    return %c0_i32, %c0_i32_0 : i32, i32
  }
  func.func @transform_3(%arg0: i32) -> (i32, i32) {
    %c0_i32 = arith.constant 0 : i32
    %c0_i32_0 = arith.constant 0 : i32
    %c0_i32_1 = arith.constant 0 : i32
    return %c0_i32, %c0_i32_0 : i32, i32
  }
  func.func @transform_4(%arg0: i32) -> (i32, i32) {
    %c0_i32 = arith.constant 0 : i32
    %c0_i32_0 = arith.constant 0 : i32
    %c0_i32_1 = arith.constant 0 : i32
    return %c0_i32, %c0_i32_0 : i32, i32
  }
  func.func @transform_5(%arg0: i32) -> (i32, i32) {
    %c0_i32 = arith.constant 0 : i32
    %c0_i32_0 = arith.constant 0 : i32
    %c0_i32_1 = arith.constant 0 : i32
    return %c0_i32, %c0_i32_0 : i32, i32
  }
  func.func @transform_6(%arg0: i32) -> (i32, i32) {
    %c0_i32 = arith.constant 0 : i32
    %c0_i32_0 = arith.constant 0 : i32
    %c0_i32_1 = arith.constant 0 : i32
    return %c0_i32, %c0_i32_0 : i32, i32
  }
  func.func @transform_7(%arg0: i32) -> (i32, i32) {
    %c0_i32 = arith.constant 0 : i32
    %c0_i32_0 = arith.constant 0 : i32
    return %c0_i32, %arg0 : i32, i32
  }
}

</mosaic_0001>

<bundles_post_ra>
// kernel: tpu_custom_call.1
= control target key start
LH: loop header
LB: loop body
LE: loop exit
PB: predicated region body
PF: predicated region fallthrough
CT: control target
= control target key end

     0   :  { %s1000_s0 = inlined_call_operand.vmem [shape: f32[128,32], index: 0, kind: input, shape index: {}]   ;;  %s1001_s1 = inlined_call_operand.vmem [shape: bf16[64,32], index: 1, kind: input, shape index: {}]   ;;  %s1002_s2 = inlined_call_operand.vmem [shape: f32[64,1], index: 2, kind: input, shape index: {}]   ;;  %s1003_s3 = inlined_call_operand.vmem [shape: bf16[128,64], index: 3, kind: input, shape index: {}]   ;;  %s1004_s4 = inlined_call_operand.vmem [shape: f32[128,1], index: 4, kind: input, shape index: {}]   ;;  %s1005_s5 = inlined_call_operand.vmem [shape: f32[128,1], index: 5, kind: input, shape index: {}]   ;;  %s1006_s6 = inlined_call_operand.<no memory space> [shape: f32[1,1], index: 6, kind: input, shape index: {}]   ;;  %s1007_s7 = inlined_call_operand.hbm [shape: f32[1,128], index: 7, kind: output, shape index: {}]  }
   0x1   :  { %v12_v0 = vstv %s1006_s6 }
   0x2   :  { %13 = vst [vmem:[#allocation2] sm:$0x1] %v12_v0 }
   0x3   :  { %v68_v1 = vld [vmem:[%s1002_s2 + $0x30] sm:$0xff]  ;;  %v66_v2 = vld [vmem:[%s1002_s2 + $0x20] sm:$0xff]  ;;  %v724_v4 = vmov 0   ;;  %v45_v5 = vld [vmem:[%s1000_s0 + $0x78] sm:$0xff]  ;;  %vm130_vm0 = vcmask 261120  }
   0x4   :  { %v44_v3 = vld [vmem:[%s1000_s0 + $0x70] sm:$0xff]  ;;  %696 = vset.pattern.permute.xlu1 %v724_v4  ;;  %695 = vset.pattern.permute.xlu0 %v724_v4  ;;  %v42_v7 = vld [vmem:[%s1000_s0 + $0x60] sm:$0xff]  ;;  %v43_v8 = vld [vmem:[%s1000_s0 + $0x68] sm:$0xff] }
   0x5   :  { %102 = vperm.xlu0 %695, %v68_v1   ;;  %92 = vperm.xlu1 %696, %v66_v2   ;;  %v53_v6 = vpack.c.bf16 %v45_v5, %v44_v3  ;;  %v52_v10 = vpack.c.bf16 %v43_v8, %v42_v7  ;;  %v64_v11 = vld [vmem:[%s1002_s2 + $0x10] sm:$0xff]  ;;  %v69_v12 = vld [vmem:[%s1002_s2 + $0x38] sm:$0xff]  ;;  %v67_v13 = vld [vmem:[%s1002_s2 + $0x28] sm:$0xff] }
   0x6   :  { %697 = vset.pattern.permute.xlu2 %v724_v4 }
   0x7   :  { %v165_v9 = vsel %vm130_vm0, %v53_v6, 0  ;;  %82 = vperm.xlu2 %697, %v64_v11  }
   0x8   :  { %681 = vmatpush.bf16.xpose.msra.mxu3 %v165_v9  ;;  %167 = vmatpush.bf16.xpose.msra.mxu0 %v165_v9 }
   0x9   :  { %14 = vsyncpa [#allocation4], 0  ;;  %v162_v14 = vsel %vm130_vm0, %v52_v10, 0  ;;  %v40_v15 = vld [vmem:[%s1000_s0 + $0x50] sm:$0xff]  ;;  %v41_v16 = vld [vmem:[%s1000_s0 + $0x58] sm:$0xff]  ;;  %vm360_vm1 = vcmask 523264  }
   0xa   :  { %v65_v17 = vld [vmem:[%s1002_s2 + $0x18] sm:$0xff]  ;;  %v51_v18 = vpack.c.bf16 %v41_v16, %v40_v15  ;;  %v63_v19 = vld [vmem:[%s1002_s2 + $0x8] sm:$0xff]  ;;  %v62_v20 = vld [vmem:[%s1002_s2] sm:$0xff] }
   0xb   :  { %v38_v22 = vld [vmem:[%s1000_s0 + $0x40] sm:$0xff]  ;;  %v39_v23 = vld [vmem:[%s1000_s0 + $0x48] sm:$0xff]  ;;  %v226_v26 = vld [vmem:[%s1004_s4 + $0x10] sm:$0xff] }
   0xc   :  { %v159_v21 = vsel %vm130_vm0, %v51_v18, 0  ;;  %v224_v24 = vld [vmem:[%s1004_s4] sm:$0xff]  ;;  %v50_v25 = vpack.c.bf16 %v39_v23, %v38_v22  ;;  %v225_v27 = vld [vmem:[%s1004_s4 + $0x8] sm:$0xff]  ;;  %v36_v29 = vld [vmem:[%s1000_s0 + $0x30] sm:$0xff] }
   0xd   :  { %107 = vperm.xlu0 %695, %v69_v12   ;;  %97 = vperm.xlu1 %696, %v67_v13   ;;  %v37_v30 = vld [vmem:[%s1000_s0 + $0x38] sm:$0xff]  ;;  %v229_v33 = vld [vmem:[%s1004_s4 + $0x28] sm:$0xff]  ;;  %v228_v34 = vld [vmem:[%s1004_s4 + $0x20] sm:$0xff] }
   0xe   :  { %v156_v28 = vsel %vm130_vm0, %v50_v25, 0  ;;  %v227_v31 = vld [vmem:[%s1004_s4 + $0x18] sm:$0xff]  ;;  %v49_v32 = vpack.c.bf16 %v37_v30, %v36_v29  ;;  %v34_v36 = vld [vmem:[%s1000_s0 + $0x20] sm:$0xff]  ;;  %v35_v37 = vld [vmem:[%s1000_s0 + $0x28] sm:$0xff] }
   0xf   :  { %87 = vperm.xlu2 %697, %v65_v17   ;;  %v230_v38 = vld [vmem:[%s1004_s4 + $0x30] sm:$0xff]  ;;  %v48_v39 = vpack.c.bf16 %v35_v37, %v34_v36  ;;  %v232_v40 = vld [vmem:[%s1004_s4 + $0x40] sm:$0xff]  ;;  %v231_v41 = vld [vmem:[%s1004_s4 + $0x38] sm:$0xff] }
  0x10   :  { %682 = vmatpush.bf16.xpose.msra.mxu3 %v162_v14  ;;  %168 = vmatpush.bf16.xpose.msra.mxu0 %v162_v14  ;;  %v153_v35 = vsel %vm130_vm0, %v49_v32, 0  ;;  %v32_v43 = vld [vmem:[%s1000_s0 + $0x10] sm:$0xff]  ;;  %v33_v44 = vld [vmem:[%s1000_s0 + $0x18] sm:$0xff]  ;;  %v233_v45 = vld [vmem:[%s1004_s4 + $0x48] sm:$0xff] }
  0x11   :  { %v150_v42 = vsel %vm130_vm0, %v48_v39, 0  ;;  %v47_v46 = vpack.c.bf16 %v33_v44, %v32_v43  ;;  %v235_v47 = vld [vmem:[%s1004_s4 + $0x58] sm:$0xff]  ;;  %v234_v48 = vld [vmem:[%s1004_s4 + $0x50] sm:$0xff]  ;;  %v30_v50 = vld [vmem:[%s1000_s0] sm:$0xff] }
  0x12   :  { %v31_v51 = vld [vmem:[%s1000_s0 + $0x8] sm:$0xff]  ;;  %v236_v52 = vld [vmem:[%s1004_s4 + $0x60] sm:$0xff]  ;;  %v238_v54 = vld [vmem:[%s1004_s4 + $0x70] sm:$0xff] }
  0x13   :  { %v147_v49 = vsel %vm130_vm0, %v47_v46, 0  ;;  %v46_v53 = vpack.c.bf16 %v31_v51, %v30_v50  ;;  %v237_v55 = vld [vmem:[%s1004_s4 + $0x68] sm:$0xff]  ;;  %v239_v57 = vld [vmem:[%s1004_s4 + $0x78] sm:$0xff]  ;;  %v450_v59 = vld [vmem:[%s1005_s5] sm:$0xff] }
  0x14   :  { %v451_v58 = vld [vmem:[%s1005_s5 + $0x8] sm:$0xff]  ;;  %v671_v60 = vld [vmem:[%s1001_s1 + $0x10] sm:$0xff]  ;;  %v669_v61 = vld [vmem:[%s1001_s1] sm:$0xff] }
  0x15   :  { %77 = vperm.xlu1 %696, %v63_v19   ;;  %72 = vperm.xlu0 %695, %v62_v20   ;;  %v144_v56 = vsel %vm130_vm0, %v46_v53, 0  ;;  %v452_v62 = vld [vmem:[%s1005_s5 + $0x10] sm:$0xff]  ;;  %v454_v63 = vld [vmem:[%s1005_s5 + $0x20] sm:$0xff]  ;;  %v453_v0 = vld [vmem:[%s1005_s5 + $0x18] sm:$0xff] }
  0x16   :  { %v455_v1 = vld [vmem:[%s1005_s5 + $0x28] sm:$0xff]  ;;  %v457_v2 = vld [vmem:[%s1005_s5 + $0x38] sm:$0xff]  ;;  %v456_v3 = vld [vmem:[%s1005_s5 + $0x30] sm:$0xff] }
  0x17   :  { %242 = vperm.xlu2 %697, %v224_v24   ;;  %v672_v4 = vld [vmem:[%s1001_s1 + $0x18] sm:$0xff]  ;;  %v670_v5 = vld [vmem:[%s1001_s1 + $0x8] sm:$0xff]  ;;  %v458_v6 = vld [vmem:[%s1005_s5 + $0x40] sm:$0xff]  ;;  %s600_s1 = sshll.u32 %s1007_s7, 4  ;;  %s601_s1 = int_to_ptr.hbm [resolvable:$true] %s600_s1 }
  0x18   :  { %683 = vmatpush.bf16.xpose.msra.mxu3 %v159_v21  ;;  %169 = vmatpush.bf16.xpose.msra.mxu0 %v159_v21  ;;  %v460_v7 = vld [vmem:[%s1005_s5 + $0x50] sm:$0xff]  ;;  %v459_v8 = vld [vmem:[%s1005_s5 + $0x48] sm:$0xff]  ;;  %v461_v9 = vld [vmem:[%s1005_s5 + $0x58] sm:$0xff] }
  0x19   :  { %v463_v10 = vld [vmem:[%s1005_s5 + $0x68] sm:$0xff]  ;;  %v462_v11 = vld [vmem:[%s1005_s5 + $0x60] sm:$0xff]  ;;  %v464_v12 = vld [vmem:[%s1005_s5 + $0x70] sm:$0xff] }
  0x1a   :  { %v583_v13 = vld [vmem:[#allocation2] sm:$0x1]  ;;  %v465_v14 = vld [vmem:[%s1005_s5 + $0x78] sm:$0xff]  ;;  %v674_v53 = vld [vmem:[%s1003_s3 + $0x8] sm:$0xff] }
  0x1b   :  { %v673_v51 = vld [vmem:[%s1003_s3] sm:$0xff] }
  0x1d   :  { %252 = vperm.xlu1 %696, %v226_v26   ;;  %247 = vperm.xlu0 %695, %v225_v27  }
  0x1f   :  { %257 = vperm.xlu2 %697, %v227_v31  }
  0x20   :  { %684 = vmatpush.bf16.xpose.msra.mxu3 %v156_v28  ;;  %170 = vmatpush.bf16.xpose.msra.mxu0 %v156_v28 }
  0x25   :  { %267 = vperm.xlu1 %696, %v229_v33   ;;  %262 = vperm.xlu0 %695, %v228_v34  }
  0x27   :  { %272 = vperm.xlu2 %697, %v230_v38  }
  0x28   :  { %685 = vmatpush.bf16.xpose.msra.mxu3 %v153_v35  ;;  %171 = vmatpush.bf16.xpose.msra.mxu0 %v153_v35 }
  0x2d   :  { %282 = vperm.xlu1 %696, %v232_v40   ;;  %277 = vperm.xlu0 %695, %v231_v41  }
  0x2f   :  { %287 = vperm.xlu2 %697, %v233_v45  }
  0x30   :  { %686 = vmatpush.bf16.xpose.msra.mxu3 %v150_v42  ;;  %172 = vmatpush.bf16.xpose.msra.mxu0 %v150_v42 }
  0x35   :  { %297 = vperm.xlu1 %696, %v235_v47   ;;  %292 = vperm.xlu0 %695, %v234_v48  }
  0x37   :  { %302 = vperm.xlu2 %697, %v236_v52   ;;  %v677_v52 = vld [vmem:[%s1003_s3 + $0x20] sm:$0xff] }
  0x38   :  { %687 = vmatpush.bf16.xpose.msra.mxu3 %v147_v49  ;;  %173 = vmatpush.bf16.xpose.msra.mxu0 %v147_v49 }
  0x3d   :  { %312 = vperm.xlu1 %696, %v238_v54   ;;  %307 = vperm.xlu0 %695, %v237_v55   ;;  %v678_v54 = vld [vmem:[%s1003_s3 + $0x28] sm:$0xff]  ;;  %v675_v55 = vld [vmem:[%s1003_s3 + $0x10] sm:$0xff] }
  0x3f   :  { %317 = vperm.xlu2 %697, %v239_v57   ;;  %v676_v57 = vld [vmem:[%s1003_s3 + $0x18] sm:$0xff] }
  0x40   :  { %688 = vmatpush.bf16.xpose.msra.mxu3 %v144_v56  ;;  %174 = vmatpush.bf16.xpose.msra.mxu0 %v144_v56  ;;  %v679_v56 = vld [vmem:[%s1003_s3 + $0x30] sm:$0xff] }
  0x45   :  { %473 = vperm.xlu1 %696, %v451_v58   ;;  %468 = vperm.xlu0 %695, %v450_v59   ;;  %v680_v58 = vld [vmem:[%s1003_s3 + $0x38] sm:$0xff]  ;;  %s725_s3 = smov [#allocation3]  }
  0x46   :  { %s598_s8 = sshll.u32 %s725_s3, 4  ;;  %s599_s8 = int_to_ptr.vmem [resolvable:$true] %s598_s8 }
  0x47   :  { %627 = vmatmul.msk.bf16.vlgmr.msra.gmra.mxu3 %vm130_vm0, %v671_v60  ;;  %625 = vmatmul.msk.bf16.vlgmr.msra.gmra.mxu0 %vm130_vm0, %v669_v61 }
  0x48   :  { %478 = vperm.xlu2 %697, %v452_v62  }
  0x4d   :  { %488 = vperm.xlu1 %696, %v454_v63   ;;  %483 = vperm.xlu0 %695, %v453_v0  }
  0x50   :  { %493 = vperm.xlu2 %697, %v455_v1  }
  0x55   :  { %503 = vperm.xlu1 %696, %v457_v2   ;;  %498 = vperm.xlu0 %695, %v456_v3  }
  0x57   :  { %628 = vmatmul.msk.bf16.gmra.mxu3 %vm130_vm0, %v672_v4  ;;  %626 = vmatmul.msk.bf16.gmra.mxu0 %vm130_vm0, %v670_v5 }
  0x58   :  { %508 = vperm.xlu2 %697, %v458_v6  }
  0x5d   :  { %518 = vperm.xlu1 %696, %v460_v7   ;;  %513 = vperm.xlu0 %695, %v459_v8  }
  0x60   :  { %523 = vperm.xlu2 %697, %v461_v9  }
  0x61   :  { %v83_v23 = vpop.permute.xlu2 %82 }
  0x65   :  { %533 = vperm.xlu1 %696, %v463_v10   ;;  %528 = vperm.xlu0 %695, %v462_v11  }
  0x68   :  { %538 = vperm.xlu2 %697, %v464_v12  }
  0x69   :  { %v88_v34 = vpop.permute.xlu2 %87 }
  0x6d   :  { %586 = vperm.xlu1 %696, %v583_v13   ;;  %543 = vperm.xlu0 %695, %v465_v14  }
  0x71   :  { %v243_v59 = vpop.permute.xlu2 %242 }
  0x77   :  { %v103_v19 = vpop.permute.xlu0 %102  ;;  %v93_v20 = vpop.permute.xlu1 %92 }
  0x79   :  { %v258_v62 = vpop.permute.xlu2 %257 }
  0x7f   :  { %v108_v24 = vpop.permute.xlu0 %107  ;;  %v98_v25 = vpop.permute.xlu1 %97 }
  0x81   :  { %v273_v1 = vpop.permute.xlu2 %272 }
  0x87   :  { %v73_v39 = vpop.permute.xlu0 %72  ;;  %v78_v41 = vpop.permute.xlu1 %77 }
  0x89   :  { %v288_v5 = vpop.permute.xlu2 %287 }
  0x8f   :  { %v248_v60 = vpop.permute.xlu0 %247  ;;  %v253_v61 = vpop.permute.xlu1 %252 }
  0x91   :  { %v985_v10 = vpop.permute.xlu2 %302 }
  0x97   :  { %v263_v63 = vpop.permute.xlu0 %262  ;;  %v268_v0 = vpop.permute.xlu1 %267 }
  0x9f   :  { %v278_v2 = vpop.permute.xlu0 %277  ;;  %v283_v4 = vpop.permute.xlu1 %282 }
  0xa7   :  { %v293_v6 = vpop.permute.xlu0 %292  ;;  %v298_v9 = vpop.permute.xlu1 %297 }
  0xaf   :  { %v987_v12 = vpop.permute.xlu0 %307  ;;  %v989_v14 = vpop.permute.xlu1 %312 }
  0xc4   :  { %v176_v15 = vpop.f32.mrf.mxu0 }
  0xc5   :  { %v177_v42 = vadd.f32 %v176_v15, %v73_v39 }
  0xc7   :  { %v196_v47 = vmax.f32 %v177_v42, 0.0 }
  0xca   :  { %v186_v16 = vpop.f32.mrf.mxu3 }
  0xcb   :  { %v187_v31 = vadd.f32 %v186_v16, %v93_v20  ;;  %v991_v16 = vpop.permute.xlu2 %317  ;;  %v474_v20 = vpop.permute.xlu1 %473 }
  0xcc   :  { %v178_v17 = vpop.f32.mrf.mxu0 }
  0xcd   :  { %v200_v40 = vmax.f32 %v187_v31, 0.0  ;;  %v179_v43 = vadd.f32 %v178_v17, %v78_v41 }
  0xcf   :  { %v197_v48 = vmax.f32 %v179_v43, 0.0 }
  0xd1   :  { %v220_v50 = vpack.c.bf16 %v197_v48, %v196_v47 }
  0xd2   :  { %v188_v18 = vpop.f32.mrf.mxu3 }
  0xd3   :  { %v189_v28 = vadd.f32 %v188_v18, %v98_v25  ;;  %v469_v18 = vpop.permute.xlu0 %468 }
  0xd4   :  { %v181_v21 = vpop.f32.mrf.mxu0 }
  0xd5   :  { %v201_v35 = vmax.f32 %v189_v28, 0.0  ;;  %v182_v36 = vadd.f32 %v181_v21, %v83_v23 }
  0xd7   :  { %v198_v44 = vmax.f32 %v182_v36, 0.0  ;;  %v222_v46 = vpack.c.bf16 %v201_v35, %v200_v40 }
  0xda   :  { %v191_v22 = vpop.f32.mrf.mxu3 }
  0xdb   :  { %v192_v26 = vadd.f32 %v191_v22, %v103_v19  ;;  %v479_v22 = vpop.permute.xlu2 %478  ;;  %v484_v23 = vpop.permute.xlu0 %483 }
  0xdc   :  { %v183_v30 = vpop.f32.mrf.mxu0 }
  0xdd   :  { %v202_v32 = vmax.f32 %v192_v26, 0.0  ;;  %v184_v37 = vadd.f32 %v183_v30, %v88_v34 }
  0xdf   :  { %v199_v45 = vmax.f32 %v184_v37, 0.0 }
  0xe1   :  { %v221_v49 = vpack.c.bf16 %v199_v45, %v198_v44 }
  0xe2   :  { %v193_v27 = vpop.f32.mrf.mxu3 }
  0xe3   :  { %v194_v29 = vadd.f32 %v193_v27, %v108_v24 }
  0xe5   :  { %v203_v33 = vmax.f32 %v194_v29, 0.0  ;;  %v489_v29 = vpop.permute.xlu1 %488 }
  0xe7   :  { %v223_v38 = vpack.c.bf16 %v203_v33, %v202_v32  ;;  %v494_v32 = vpop.permute.xlu2 %493  ;;  %v499_v33 = vpop.permute.xlu0 %498 }
  0xe9   :  { %389 = vmatpush.bf16.msra.mxu1 %v223_v38  ;;  %689 = vmatpush.bf16.msra.mxu2 %v223_v38 }
  0xed   :  { %390 = vmatpush.bf16.msra.mxu1 %v222_v46  ;;  %690 = vmatpush.bf16.msra.mxu2 %v222_v46 }
  0xf1   :  { %391 = vmatpush.bf16.msra.mxu1 %v221_v49  ;;  %691 = vmatpush.bf16.msra.mxu2 %v221_v49  ;;  %v504_v49 = vpop.permute.xlu1 %503 }
  0xf5   :  { %392 = vmatpush.bf16.msra.mxu1 %v220_v50  ;;  %692 = vmatpush.bf16.msra.mxu2 %v220_v50 }
  0xf8   :  { %661 = vmatmul.msk.bf16.vlgmr.msra.gmra.mxu1 %vm360_vm1, %v673_v51  ;;  %665 = vmatmul.msk.bf16.vlgmr.msra.gmra.mxu2 %vm360_vm1, %v677_v52 }
 0x108   :  { %662 = vmatmul.msk.bf16.gmra.mxu1 %vm360_vm1, %v674_v53  ;;  %666 = vmatmul.msk.bf16.gmra.mxu2 %vm360_vm1, %v678_v54  ;;  %v509_v53 = vpop.permute.xlu2 %508  ;;  %v514_v54 = vpop.permute.xlu0 %513 }
 0x118   :  { %663 = vmatmul.msk.bf16.gmra.mxu1 %vm360_vm1, %v675_v55  ;;  %667 = vmatmul.msk.bf16.gmra.mxu2 %vm360_vm1, %v679_v56 }
 0x128   :  { %664 = vmatmul.msk.bf16.gmra.mxu1 %vm360_vm1, %v676_v57  ;;  %668 = vmatmul.msk.bf16.gmra.mxu2 %vm360_vm1, %v680_v58 }
 0x175   :  { %v394_v3 = vpop.f32.mrf.mxu1 }
 0x176   :  { %v395_v27 = vadd.f32 %v394_v3, %v243_v59 }
 0x178   :  { %v434_v34 = vmax.f32 %v395_v27, 0.0  ;;  %v529_v27 = vpop.permute.xlu0 %528 }
 0x17a   :  { %v546_v42 = vmul.f32 %v469_v18, %v434_v34 }
 0x17b   :  { %v414_v7 = vpop.f32.mrf.mxu2 }
 0x17c   :  { %v415_v55 = vadd.f32 %v414_v7, %v283_v4 }
 0x17d   :  { %v396_v8 = vpop.f32.mrf.mxu1 }
 0x17e   :  { %v397_v25 = vadd.f32 %v396_v8, %v248_v60 }
 0x180   :  { %v435_v30 = vmax.f32 %v397_v25, 0.0  ;;  %v524_v25 = vpop.permute.xlu2 %523 }
 0x182   :  { %v547_v38 = vmul.f32 %v474_v20, %v435_v30 }
 0x183   :  { %v416_v11 = vpop.f32.mrf.mxu2 }
 0x184   :  { %v562_v46 = vadd.f32 %v547_v38, %v546_v42  ;;  %v417_v60 = vadd.f32 %v416_v11, %v288_v5 }
 0x185   :  { %v399_v13 = vpop.f32.mrf.mxu1 }
 0x186   :  { %v400_v28 = vadd.f32 %v399_v13, %v253_v61  ;;  %v443_v13 = vmax.f32 %v417_v60, 0.0 }
 0x188   :  { %v436_v35 = vmax.f32 %v400_v28, 0.0 }
 0x18a   :  { %v548_v43 = vmul.f32 %v479_v22, %v436_v35 }
 0x18b   :  { %v419_v15 = vpop.f32.mrf.mxu2 }
 0x18c   :  { %v563_v50 = vadd.f32 %v562_v46, %v548_v43 }
 0x18d   :  { %v401_v17 = vpop.f32.mrf.mxu1 }
 0x18e   :  { %v402_v31 = vadd.f32 %v401_v17, %v258_v62 }
 0x190   :  { %v437_v39 = vmax.f32 %v402_v31, 0.0 }
 0x192   :  { %v549_v47 = vmul.f32 %v484_v23, %v437_v39 }
 0x193   :  { %v421_v19 = vpop.f32.mrf.mxu2 }
 0x194   :  { %v564_v56 = vadd.f32 %v563_v50, %v549_v47  ;;  %v422_v17 = vadd.f32 %v421_v19, %v298_v9 }
 0x195   :  { %v404_v21 = vpop.f32.mrf.mxu1 }
 0x196   :  { %v405_v36 = vadd.f32 %v404_v21, %v263_v63  ;;  %v519_v21 = vpop.permute.xlu1 %518  ;;  %v445_v5 = vmax.f32 %v422_v17, 0.0 }
 0x198   :  { %v438_v44 = vmax.f32 %v405_v36, 0.0 }
 0x19a   :  { %v550_v51 = vmul.f32 %v489_v29, %v438_v44  ;;  %v557_v29 = vmul.f32 %v524_v25, %v445_v5 }
 0x19b   :  { %v424_v24 = vpop.f32.mrf.mxu2 }
 0x19c   :  { %v565_v61 = vadd.f32 %v564_v56, %v550_v51  ;;  %v425_v4 = vadd.f32 %v424_v24, %v985_v10 }
 0x19d   :  { %v406_v26 = vpop.f32.mrf.mxu1 }
 0x19e   :  { %v407_v40 = vadd.f32 %v406_v26, %v268_v0  ;;  %v442_v0 = vmax.f32 %v415_v55, 0.0  ;;  %v555_v26 = vmul.f32 %v514_v54, %v443_v13  ;;  %v446_v28 = vmax.f32 %v425_v4, 0.0  ;;  %v534_v34 = vpop.permute.xlu1 %533 }
 0x1a0   :  { %v439_v48 = vmax.f32 %v407_v40, 0.0  ;;  %v554_v22 = vmul.f32 %v509_v53, %v442_v0  ;;  %v558_v10 = vmul.f32 %v529_v27, %v446_v28  ;;  %v544_v40 = vpop.permute.xlu0 %543 }
 0x1a2   :  { %v551_v57 = vmul.f32 %v494_v32, %v439_v48 }
 0x1a3   :  { %v426_v37 = vpop.f32.mrf.mxu2 }
 0x1a4   :  { %v566_v3 = vadd.f32 %v565_v61, %v551_v57  ;;  %v427_v11 = vadd.f32 %v426_v37, %v987_v12  ;;  %v539_v37 = vpop.permute.xlu2 %538 }
 0x1a5   :  { %v409_v41 = vpop.f32.mrf.mxu1 }
 0x1a6   :  { %v410_v45 = vadd.f32 %v409_v41, %v273_v1  ;;  %v420_v1 = vadd.f32 %v419_v15, %v293_v6  ;;  %v447_v30 = vmax.f32 %v427_v11, 0.0  ;;  %v587_v47 = vpop.permute.xlu1 %586 }
 0x1a7   :  { %v589_v48 = vperm.slane %v587_v47, 0 }
 0x1a8   :  { %v440_v52 = vmax.f32 %v410_v45, 0.0  ;;  %v444_v23 = vmax.f32 %v420_v1, 0.0  ;;  %v559_v35 = vmul.f32 %v534_v34, %v447_v30 }
 0x1aa   :  { %v552_v62 = vmul.f32 %v499_v33, %v440_v52  ;;  %v556_v15 = vmul.f32 %v519_v21, %v444_v23 }
 0x1ab   :  { %v429_v58 = vpop.f32.mrf.mxu2 }
 0x1ac   :  { %v567_v18 = vadd.f32 %v566_v3, %v552_v62  ;;  %v430_v9 = vadd.f32 %v429_v58, %v989_v14 }
 0x1ad   :  { %v411_v59 = vpop.f32.mrf.mxu1 }
 0x1ae   :  { %v412_v63 = vadd.f32 %v411_v59, %v278_v2  ;;  %v448_v24 = vmax.f32 %v430_v9, 0.0 }
 0x1b0   :  { %v441_v8 = vmax.f32 %v412_v63, 0.0  ;;  %v560_v38 = vmul.f32 %v539_v37, %v448_v24 }
 0x1b2   :  { %v553_v20 = vmul.f32 %v504_v49, %v441_v8 }
 0x1b3   :  { %v431_v6 = vpop.f32.mrf.mxu2 }
 0x1b4   :  { %v568_v7 = vadd.f32 %v567_v18, %v553_v20  ;;  %v432_v32 = vadd.f32 %v431_v6, %v991_v16 }
 0x1b6   :  { %v569_v2 = vadd.f32 %v568_v7, %v554_v22  ;;  %v449_v36 = vmax.f32 %v432_v32, 0.0 }
 0x1b8   :  { %v570_v19 = vadd.f32 %v569_v2, %v555_v26  ;;  %v561_v41 = vmul.f32 %v544_v40, %v449_v36 }
 0x1ba   :  { %v571_v31 = vadd.f32 %v570_v19, %v556_v15 }
 0x1bc   :  { %v572_v33 = vadd.f32 %v571_v31, %v557_v29 }
 0x1be   :  { %v573_v12 = vadd.f32 %v572_v33, %v558_v10 }
 0x1c0   :  { %v574_v39 = vadd.f32 %v573_v12, %v559_v35 }
 0x1c2   :  { %v575_v42 = vadd.f32 %v574_v39, %v560_v38 }
 0x1c4   :  { %v576_v14 = vadd.f32 %v575_v42, %v561_v41 }
 0x1c6   :  { %v577_v43 = vrot.slane %v576_v14, 4 }
 0x1c8   :  { %v578_v44 = vadd.f32 %v577_v43, %v576_v14 }
 0x1ca   :  { %v579_v45 = vrot.slane %v578_v44, 2 }
 0x1cc   :  { %v580_v46 = vadd.f32 %v579_v45, %v578_v44 }
 0x1ce   :  { %v581_v16 = vrot.slane %v580_v46, 1 }
 0x1d0   :  { %v582_v49 = vadd.f32 %v581_v16, %v580_v46 }
 0x1d2   :  { %v590_v50 = vadd.f32 %v589_v48, %v582_v49 }
 0x1d4   :  { %v591_v51 = vmax.f32 %v590_v50, 0.0 }
 0x1d6   :  { %592 = vst [vmem:[#allocation3] sm:$0x1] %v591_v51 }
 0x1d7   :  { %603 = dma.vmem_to_hbm [thread:$0]  %s599_s8, 16, %s601_s1, [#allocation4]  }
 0x1d8   :  { %722 = dma.done.wait [#allocation4], 16  }
 0x1d9   :  { %723 = vsyncadd [#allocation4], 4294967280 }
 0x1da   :  { %608 = vsyncpa [#allocation4], 1 }

</bundles_post_ra>
